<compile_context>
chip_gen: v7x
topology: tpu7x:2x2x1
jax: 0.10.0
libtpu: 0.0.40
codegen_flags: <defaults>
</compile_context>

<pallas_src>
import functools

import jax
import jax.numpy as jnp
from jax.experimental import pallas as pl
from jax.experimental.pallas import tpu as pltpu


# ----------------------------- Pallas kernel -----------------------------

def _ae_kernel(x_ref, tbias_ref, w_enc_ref, w_dec_ref, b_dec_ref, o_ref):
    # x_ref:     (TB, D)  bf16   flattened image batch tile
    # tbias_ref: (1,  H)  f32    precomputed time bias:  t_emb @ W_time + b_enc
    # w_enc_ref: (D,  H)  bf16   encoder weight (VMEM-resident across the grid)
    # w_dec_ref: (H,  D)  bf16   decoder weight (VMEM-resident across the grid)
    # b_dec_ref: (1,  D)  f32
    # o_ref:     (TB, D)  f32    reconstruction tile
    x = x_ref[...]

    # Encoder matmul on MXU, f32 accumulation.
    h = jnp.dot(x, w_enc_ref[...], preferred_element_type=jnp.float32)   # (TB, H) f32
    h = h + tbias_ref[...]                                               # (1,H) broadcast, f32
    h = jnp.maximum(h, 0.0)                                              # ReLU in f32 (v5e VPU)

    # Decoder matmul on MXU; cast activations to bf16 only at the matmul input.
    y = jnp.dot(h.astype(w_dec_ref.dtype), w_dec_ref[...],
                preferred_element_type=jnp.float32)                      # (TB, D) f32
    y = y + b_dec_ref[...]
    o_ref[...] = y.astype(o_ref.dtype)


def _round_up(x, m):
    return (x + m - 1) // m * m


def ae_forward(x_flat, t_emb, params):
    """Time-conditioned AE forward on flattened inputs via one batch-tiled pallas_call."""
    B, D = x_flat.shape
    P = t_emb.shape[-1]
    H = params["w_enc"].shape[1]

    # Fold time conditioning into a single (1, H) bias in plain JAX (tiny op).
    t_bias = (jnp.dot(t_emb.reshape(1, P).astype(jnp.float32),
                      params["w_time"].astype(jnp.float32))
              + params["b_enc"]).astype(jnp.float32)                     # (1, H)

    # Batch tiling: >=16 rows per tile (bf16 sublane packing), 128-row tiles at scale.
    TB = 128 if B >= 128 else _round_up(max(B, 1), 16)
    B_pad = _round_up(B, TB)
    nb = B_pad // TB

    x_bf16 = x_flat.astype(jnp.bfloat16)
    if B_pad != B:
        x_bf16 = jnp.pad(x_bf16, ((0, B_pad - B), (0, 0)))

    flops = 4 * B_pad * D * H                                    # two (TB,D)x(D,H)-class matmuls
    bytes_accessed = (B_pad * D * 2            # x bf16 in
                      + 2 * D * H * 2          # w_enc + w_dec bf16
                      + H * 4 + D * 4          # biases
                      + B_pad * D * 4)         # f32 out
    cost = pl.CostEstimate(flops=flops, transcendentals=0,
                           bytes_accessed=bytes_accessed)

    kernel = pl.pallas_call(
        _ae_kernel,
        out_shape=jax.ShapeDtypeStruct((B_pad, D), jnp.float32),
        grid_spec=pltpu.PrefetchScalarGridSpec(
            num_scalar_prefetch=0,
            grid=(nb,),
            in_specs=[
                pl.BlockSpec((TB, D), lambda i: (i, 0)),   # x tile marches along batch
                pl.BlockSpec((1, H), lambda i: (0, 0)),    # time bias (resident)
                pl.BlockSpec((D, H), lambda i: (0, 0)),    # w_enc (resident)
                pl.BlockSpec((H, D), lambda i: (0, 0)),    # w_dec (resident)
                pl.BlockSpec((1, D), lambda i: (0, 0)),    # b_dec (resident)
            ],
            out_specs=pl.BlockSpec((TB, D), lambda i: (i, 0)),
        ),
        compiler_params=pltpu.CompilerParams(
            dimension_semantics=("parallel",)),               # v7x: shard tiles over 2 TCs
        cost_estimate=cost,
    )
    y_pad = kernel(x_bf16, t_bias,
                   params["w_enc"], params["w_dec"], params["b_dec"])
    return y_pad[:B]


# ----------------------------- glue (plain JAX) -----------------------------

def sinusoidal_pe(time_step, dim_position: int) -> jnp.ndarray:
    """Standard sinusoidal timestep embedding, shape (dim_position,), float32.

    `time_step` may be a traced device scalar (no recompilation per diffusion step)."""
    half = dim_position // 2
    freqs = jnp.exp(-jnp.log(10000.0) * jnp.arange(half, dtype=jnp.float32) / half)
    args = jnp.asarray(time_step, jnp.float32) * freqs
    return jnp.concatenate([jnp.sin(args), jnp.cos(args)], axis=0)


def init_params(key, d_in, d_hidden, dim_position):
    k1, k2, k3, k4 = jax.random.split(key, 4)
    scale = lambda fan_in: 1.0 / jnp.sqrt(jnp.float32(fan_in))
    return {
        # Weights stored in bf16 (HBM traffic is the bottleneck); biases / time proj in f32.
        "w_enc":  (jax.random.normal(k1, (d_in, d_hidden), jnp.float32)
                   * scale(d_in)).astype(jnp.bfloat16),
        "w_time": jax.random.normal(k2, (dim_position, d_hidden), jnp.float32) * scale(dim_position),
        "b_enc":  jnp.zeros((1, d_hidden), jnp.float32),
        "w_dec":  (jax.random.normal(k3, (d_hidden, d_in), jnp.float32)
                   * scale(d_hidden)).astype(jnp.bfloat16),
        "b_dec":  jnp.zeros((1, d_in), jnp.float32),
    }


@functools.partial(jax.jit, static_argnames=("dim_position",))
def dm_forward(X_nchw, params, time_step, *, dim_position: int):
    """DM.forward(X, time): pe(time) then AE(X, time_emb). Returns same NCHW shape as X."""
    B, C, H, W = X_nchw.shape
    x_flat = X_nchw.reshape(B, C * H * W).astype(jnp.float32)
    t_emb = sinusoidal_pe(time_step, dim_position)
    y_flat = ae_forward(x_flat, t_emb, params)
    return y_flat.reshape(B, C, H, W)


# ----------------------------- demo -----------------------------

if __name__ == "__main__":
    # Small shapes consistent with the module: NCHW image + integer diffusion timestep.
    B, C, Himg, Wimg = 2, 4, 16, 16
    dim_position = 32        # time-embedding width (DM(dim_position=32))
    d_in = C * Himg * Wimg   # 1024
    d_hidden = 256

    key = jax.random.PRNGKey(0)
    kx, kp = jax.random.split(key)
    X = jax.random.normal(kx, (B, C, Himg, Wimg), jnp.float32)
    params = init_params(kp, d_in, d_hidden, dim_position)

    time_step = jnp.int32(7)   # traced device scalar: no recompile across diffusion steps
    out = dm_forward(X, params, time_step, dim_position=dim_position)
    out = jax.block_until_ready(out)

    assert out.shape == (B, C, Himg, Wimg), out.shape
    assert out.dtype == jnp.float32
    assert bool(jnp.all(jnp.isfinite(out)))
    print("KERNEL_OK")
</pallas_src>

<mosaic_0001>
module attributes {stable_mosaic.version = 11 : i64} {
  func.func @_ae_kernel(%arg0: i32, %arg1: memref<16x1024xbf16, #tpu.memory_space<vmem>>, %arg2: memref<1x256xf32, #tpu.memory_space<vmem>>, %arg3: memref<1024x256xbf16, #tpu.memory_space<vmem>>, %arg4: memref<256x1024xbf16, #tpu.memory_space<vmem>>, %arg5: memref<1x1024xf32, #tpu.memory_space<vmem>>, %arg6: memref<16x1024xf32, #tpu.memory_space<vmem>>) attributes {dimension_semantics = [#tpu.dimension_semantics<parallel>], iteration_bounds = array<i64: 1>, scalar_prefetch = 0 : i64, scratch_operands = 0 : i64, tpu.core_type = #tpu.core_type<tc>, window_params = [{transform_indices = @transform_0, window_bounds = array<i64: 16, 1024>}, {pipeline_mode = #tpu.pipeline_mode<synchronous>, transform_indices = @transform_1, window_bounds = array<i64: 1, 256>}, {pipeline_mode = #tpu.pipeline_mode<synchronous>, transform_indices = @transform_2, window_bounds = array<i64: 1024, 256>}, {pipeline_mode = #tpu.pipeline_mode<synchronous>, transform_indices = @transform_3, window_bounds = array<i64: 256, 1024>}, {pipeline_mode = #tpu.pipeline_mode<synchronous>, transform_indices = @transform_4, window_bounds = array<i64: 1, 1024>}, {transform_indices = @transform_5, window_bounds = array<i64: 16, 1024>}]} {
    %c0 = arith.constant 0 : index
    %c0_0 = arith.constant 0 : index
    %0 = vector.load %arg1[%c0, %c0_0] : memref<16x1024xbf16, #tpu.memory_space<vmem>>, vector<16x1024xbf16>
    %c0_1 = arith.constant 0 : index
    %c0_2 = arith.constant 0 : index
    %1 = vector.load %arg3[%c0_1, %c0_2] : memref<1024x256xbf16, #tpu.memory_space<vmem>>, vector<1024x256xbf16>
    %cst = arith.constant dense<0.000000e+00> : vector<16x256xf32>
    %2 = tpu.matmul %0, %1, %cst {dimension_numbers = #tpu.dot_dimension_numbers<[1], [0], [0], [1], [0, 0, 1, 1], [], []>} : vector<16x1024xbf16>, vector<1024x256xbf16>, vector<16x256xf32> -> vector<16x256xf32>
    %c0_3 = arith.constant 0 : index
    %c0_4 = arith.constant 0 : index
    %3 = vector.load %arg2[%c0_3, %c0_4] : memref<1x256xf32, #tpu.memory_space<vmem>>, vector<1x256xf32>
    %4 = vector.broadcast %3 : vector<1x256xf32> to vector<16x256xf32>
    %5 = arith.addf %2, %4 : vector<16x256xf32>
    %cst_5 = arith.constant 0.000000e+00 : f32
    %6 = vector.broadcast %cst_5 : f32 to vector<16x256xf32>
    %7 = arith.maximumf %5, %6 : vector<16x256xf32>
    %8 = arith.truncf %7 : vector<16x256xf32> to vector<16x256xbf16>
    %c0_6 = arith.constant 0 : index
    %c0_7 = arith.constant 0 : index
    %9 = vector.load %arg4[%c0_6, %c0_7] : memref<256x1024xbf16, #tpu.memory_space<vmem>>, vector<256x1024xbf16>
    %cst_8 = arith.constant dense<0.000000e+00> : vector<16x1024xf32>
    %10 = tpu.matmul %8, %9, %cst_8 {dimension_numbers = #tpu.dot_dimension_numbers<[1], [0], [0], [1], [0, 0, 1, 1], [], []>} : vector<16x256xbf16>, vector<256x1024xbf16>, vector<16x1024xf32> -> vector<16x1024xf32>
    %c0_9 = arith.constant 0 : index
    %c0_10 = arith.constant 0 : index
    %11 = vector.load %arg5[%c0_9, %c0_10] : memref<1x1024xf32, #tpu.memory_space<vmem>>, vector<1x1024xf32>
    %12 = vector.broadcast %11 : vector<1x1024xf32> to vector<16x1024xf32>
    %13 = arith.addf %10, %12 : vector<16x1024xf32>
    %c0_11 = arith.constant 0 : index
    %c0_12 = arith.constant 0 : index
    %14 = vector.load %arg6[%c0_11, %c0_12] : memref<16x1024xf32, #tpu.memory_space<vmem>>, vector<16x1024xf32>
    tpu.vector_store %arg6[%c0_11, %c0_12], %13 {strides = array<i32>} : memref<16x1024xf32, #tpu.memory_space<vmem>>, vector<16x1024xf32>,
    return
  }
  func.func @transform_0(%arg0: i32) -> (i32, i32) {
    %c0_i32 = arith.constant 0 : i32
    %c0_i32_0 = arith.constant 0 : i32
    return %arg0, %c0_i32 : i32, i32
  }
  func.func @transform_1(%arg0: i32) -> (i32, i32) {
    %c0_i32 = arith.constant 0 : i32
    %c0_i32_0 = arith.constant 0 : i32
    %c0_i32_1 = arith.constant 0 : i32
    return %c0_i32, %c0_i32_0 : i32, i32
  }
  func.func @transform_2(%arg0: i32) -> (i32, i32) {
    %c0_i32 = arith.constant 0 : i32
    %c0_i32_0 = arith.constant 0 : i32
    %c0_i32_1 = arith.constant 0 : i32
    return %c0_i32, %c0_i32_0 : i32, i32
  }
  func.func @transform_3(%arg0: i32) -> (i32, i32) {
    %c0_i32 = arith.constant 0 : i32
    %c0_i32_0 = arith.constant 0 : i32
    %c0_i32_1 = arith.constant 0 : i32
    return %c0_i32, %c0_i32_0 : i32, i32
  }
  func.func @transform_4(%arg0: i32) -> (i32, i32) {
    %c0_i32 = arith.constant 0 : i32
    %c0_i32_0 = arith.constant 0 : i32
    %c0_i32_1 = arith.constant 0 : i32
    return %c0_i32, %c0_i32_0 : i32, i32
  }
  func.func @transform_5(%arg0: i32) -> (i32, i32) {
    %c0_i32 = arith.constant 0 : i32
    %c0_i32_0 = arith.constant 0 : i32
    return %arg0, %c0_i32 : i32, i32
  }
}

</mosaic_0001>

<bundles_post_ra>
// kernel: dm_forward.1
= control target key start
LH: loop header
LB: loop body
LE: loop exit
PB: predicated region body
PF: predicated region fallthrough
CT: control target
= control target key end

     0   :  { %10 = vsyncpa [#allocation3], 0  ;;  %s2776_s0 = inlined_call_operand.vmem [shape: bf16[16,1024], index: 0, kind: input, shape index: {}]   ;;  %s2777_s1 = inlined_call_operand.vmem [shape: f32[1,256], index: 1, kind: input, shape index: {}]   ;;  %s2778_s2 = inlined_call_operand.hbm [shape: bf16[1024,256], index: 2, kind: input, shape index: {}]   ;;  %s2779_s3 = inlined_call_operand.hbm [shape: bf16[256,1024], index: 3, kind: input, shape index: {}]   ;;  %s2780_s4 = inlined_call_operand.vmem [shape: f32[1,1024], index: 4, kind: input, shape index: {}]   ;;  %s2781_s5 = inlined_call_operand.vmem [shape: f32[16,1024], index: 5, kind: output, shape index: {}]  }
   0x1   :  { %11 = vsyncpa [#allocation5], 0  ;;  %s2584_s18 = smov [#allocation2]   ;;  %s2536_s22 = scalar_lea.hbm %s2778_s2, 16384 }
   0x2   :  { %s21_s19 = sshll.u32 %s2584_s18, 4  ;;  %p2537_p0 = scmp.ne.s32.totalorder %s2778_s2, %s2536_s22  ;;  %s22_s19 = int_to_ptr.vmem [resolvable:$true] %s21_s19 }
   0x3   :  { %p2540_p1 = scmp.lt.u32.totalorder %s2536_s22, %s2778_s2 }
   0x5   :  { %p2542_p2 = pnand %p2540_p1, %p2537_p0 }
   0x7   :  { %2545 = shalt.err (!%p2542_p2)
}
   0x8   :  { %s2546_s27 = scalar_lea.vmem %s22_s19, 16384  ;;  %p2551_p4 = scmp.lt.s32.totalorder %s22_s19, %s22_s19 }
   0x9   :  { %p2547_p3 = scmp.ne.s32.totalorder %s22_s19, %s2546_s27  ;;  %p2552_p5 = scmp.lt.s32.totalorder %s2546_s27, %s2546_s27 }
   0xb   :  { %p2553_p6 = por %p2552_p5, %p2551_p4 }
   0xd   :  { %p2554_p7 = pnand %p2553_p6, %p2547_p3 }
   0xf   :  { %2557 = shalt.err (!%p2554_p7)
}
  0x10   :  { %s2585_s28 = smov 128   ;;  %s2586_s29 = smov 8  }
  0x11   :  { %27 = dma.hbm_to_vmem [thread:$0]  %s2778_s2, 16384, %s22_s19, [#allocation3], %s2585_s28, %s2585_s28, %s2586_s29  }
  0x12   :  { %s2587_s7 = smov [#allocation4]   ;;  %s2558_s11 = scalar_lea.hbm %s2779_s3, 16384 }
  0x13   :  { %s33_s8 = sshll.u32 %s2587_s7, 4  ;;  %p2559_p8 = scmp.ne.s32.totalorder %s2779_s3, %s2558_s11  ;;  %s34_s8 = int_to_ptr.vmem [resolvable:$true] %s33_s8 }
  0x14   :  { %p2562_p9 = scmp.lt.u32.totalorder %s2558_s11, %s2779_s3 }
  0x16   :  { %p2564_p10 = pnand %p2562_p9, %p2559_p8 }
  0x18   :  { %2567 = shalt.err (!%p2564_p10)
}
  0x19   :  { %s2568_s16 = scalar_lea.vmem %s34_s8, 16384  ;;  %p2573_p12 = scmp.lt.s32.totalorder %s34_s8, %s34_s8 }
  0x1a   :  { %p2569_p11 = scmp.ne.s32.totalorder %s34_s8, %s2568_s16  ;;  %p2574_p13 = scmp.lt.s32.totalorder %s2568_s16, %s2568_s16 }
  0x1c   :  { %p2575_p0 = por %p2574_p13, %p2573_p12 }
  0x1e   :  { %p2576_p1 = pnand %p2575_p0, %p2569_p11 }
  0x20   :  { %2579 = shalt.err (!%p2576_p1)
}
  0x21   :  { %s2588_s2 = smov 512   ;;  %s2589_s17 = smov 32  }
  0x22   :  { %39 = dma.hbm_to_vmem [thread:$0]  %s2779_s3, 16384, %s34_s8, [#allocation5], %s2588_s2, %s2588_s2, %s2589_s17  }
  0x23   :  { %2580 = dma.done.wait [#allocation3], 16384  }
  0x24   :  { %2581 = vsyncadd [#allocation3], 4294950912 }
  0x25   :  { %2582 = dma.done.wait [#allocation5], 16384  }
  0x26   :  { %2583 = vsyncadd [#allocation5], 4294950912  ;;  %v2344_v0 = vld [vmem:[#allocation2 + $0x4] ss:$8 sps:$4 sm:$0xff]   ;;  %v2346_v1 = vld [vmem:[#allocation2] ss:$8 sps:$4 sm:$0xff]  }
  0x27   :  { %876 = vmatprep.subr.bf16.mxu0 %v2344_v0  ;;  %v2347_v2 = vld [vmem:[#allocation2 + $0x14] ss:$8 sps:$4 sm:$0xff]   ;;  %v2349_v3 = vld [vmem:[#allocation2 + $0x10] ss:$8 sps:$4 sm:$0xff]   ;;  %v2350_v4 = vld [vmem:[#allocation2 + $0x24] ss:$8 sps:$4 sm:$0xff]  }
  0x28   :  { %877 = vmatpush1.bf16.msra.mxu0 %v2346_v1  ;;  %v2352_v5 = vld [vmem:[#allocation2 + $0x20] ss:$8 sps:$4 sm:$0xff]   ;;  %v2353_v6 = vld [vmem:[#allocation2 + $0x34] ss:$8 sps:$4 sm:$0xff]   ;;  %v2355_v7 = vld [vmem:[#allocation2 + $0x30] ss:$8 sps:$4 sm:$0xff]  }
  0x29   :  { %878 = vmatprep.subr.bf16.mxu0 %v2347_v2  ;;  %v2356_v8 = vld [vmem:[#allocation2 + $0x44] ss:$8 sps:$4 sm:$0xff]   ;;  %v2358_v9 = vld [vmem:[#allocation2 + $0x40] ss:$8 sps:$4 sm:$0xff]   ;;  %v2359_v10 = vld [vmem:[#allocation2 + $0x54] ss:$8 sps:$4 sm:$0xff]  }
  0x2a   :  { %v2361_v11 = vld [vmem:[#allocation2 + $0x50] ss:$8 sps:$4 sm:$0xff]   ;;  %v2362_v12 = vld [vmem:[#allocation2 + $0x64] ss:$8 sps:$4 sm:$0xff]   ;;  %v2364_v16 = vld [vmem:[#allocation2 + $0x60] ss:$8 sps:$4 sm:$0xff]  }
  0x2b   :  { %v48_v13 = vld [vmem:[%s2776_s0] sm:$0xff]  ;;  %v2365_v17 = vld [vmem:[#allocation2 + $0x74] ss:$8 sps:$4 sm:$0xff]   ;;  %v2367_v18 = vld [vmem:[#allocation2 + $0x70] ss:$8 sps:$4 sm:$0xff]  }
  0x2c   :  { %879 = vmatpush1.bf16.msra.mxu0 %v2349_v3  ;;  %v52_v14 = vld [vmem:[%s2776_s0 + $0x20] sm:$0xff]  ;;  %v2371_v21 = vld [vmem:[#allocation2 + $0x94] ss:$8 sps:$4 sm:$0xff]   ;;  %v2373_v22 = vld [vmem:[#allocation2 + $0x90] ss:$8 sps:$4 sm:$0xff]  }
  0x2d   :  { %880 = vmatprep.subr.bf16.mxu0 %v2350_v4  ;;  %v2059_v15 = vcombine.high %v48_v13, %v52_v14  ;;  %v2368_v19 = vld [vmem:[#allocation2 + $0x84] ss:$8 sps:$4 sm:$0xff]   ;;  %v2370_v20 = vld [vmem:[#allocation2 + $0x80] ss:$8 sps:$4 sm:$0xff]   ;;  %v2377_v25 = vld [vmem:[#allocation2 + $0xb4] ss:$8 sps:$4 sm:$0xff]   ;;  %v2058_v38 = vcombine.low %v48_v13, %v52_v14 }
  0x2e   :  { %v2374_v23 = vld [vmem:[#allocation2 + $0xa4] ss:$8 sps:$4 sm:$0xff]   ;;  %v2376_v24 = vld [vmem:[#allocation2 + $0xa0] ss:$8 sps:$4 sm:$0xff]   ;;  %v2379_v26 = vld [vmem:[#allocation2 + $0xb0] ss:$8 sps:$4 sm:$0xff]  }
  0x2f   :  { %908 = vmatprep.mubr.bf16.mxu0 %v2059_v15  ;;  %v2380_v27 = vld [vmem:[#allocation2 + $0xc4] ss:$8 sps:$4 sm:$0xff]   ;;  %v2382_v28 = vld [vmem:[#allocation2 + $0xc0] ss:$8 sps:$4 sm:$0xff]   ;;  %v2383_v29 = vld [vmem:[#allocation2 + $0xd4] ss:$8 sps:$4 sm:$0xff]  }
  0x30   :  { %881 = vmatpush1.bf16.msra.mxu0 %v2352_v5  ;;  %v2385_v30 = vld [vmem:[#allocation2 + $0xd0] ss:$8 sps:$4 sm:$0xff]   ;;  %v2386_v31 = vld [vmem:[#allocation2 + $0xe4] ss:$8 sps:$4 sm:$0xff]   ;;  %v2388_v32 = vld [vmem:[#allocation2 + $0xe0] ss:$8 sps:$4 sm:$0xff]  }
  0x31   :  { %882 = vmatprep.subr.bf16.mxu0 %v2353_v6  ;;  %v2389_v33 = vld [vmem:[#allocation2 + $0xf4] ss:$8 sps:$4 sm:$0xff]   ;;  %v2391_v34 = vld [vmem:[#allocation2 + $0xf0] ss:$8 sps:$4 sm:$0xff]   ;;  %v2394_v35 = vld [vmem:[#allocation2 + $0x104] ss:$8 sps:$4 sm:$0xff]  }
  0x32   :  { %v2653_v36 = vld [vmem:[%s2776_s0 + $0x8] sm:$0xff]  ;;  %v2397_v41 = vld [vmem:[#allocation2 + $0x114] ss:$8 sps:$4 sm:$0xff]   ;;  %v2395_v42 = vld [vmem:[#allocation2 + $0x110] ss:$8 sps:$4 sm:$0xff]  }
  0x33   :  { %v2658_v37 = vld [vmem:[%s2776_s0 + $0x28] sm:$0xff]  ;;  %v2403_v45 = vld [vmem:[#allocation2 + $0x134] ss:$8 sps:$4 sm:$0xff]   ;;  %v2401_v46 = vld [vmem:[#allocation2 + $0x130] ss:$8 sps:$4 sm:$0xff]  }
  0x34   :  { %883 = vmatpush1.bf16.msra.mxu0 %v2355_v7  ;;  %v2392_v39 = vld [vmem:[#allocation2 + $0x100] ss:$8 sps:$4 sm:$0xff]   ;;  %v2061_v40 = vcombine.high %v2653_v36, %v2658_v37  ;;  %v2400_v43 = vld [vmem:[#allocation2 + $0x124] ss:$8 sps:$4 sm:$0xff]   ;;  %v2409_v49 = vld [vmem:[#allocation2 + $0x154] ss:$8 sps:$4 sm:$0xff]  }
  0x35   :  { %884 = vmatprep.subr.bf16.mxu0 %v2356_v8  ;;  %v2398_v44 = vld [vmem:[#allocation2 + $0x120] ss:$8 sps:$4 sm:$0xff]   ;;  %v2406_v47 = vld [vmem:[#allocation2 + $0x144] ss:$8 sps:$4 sm:$0xff]   ;;  %v2407_v50 = vld [vmem:[#allocation2 + $0x150] ss:$8 sps:$4 sm:$0xff]  }
  0x36   :  { %v2404_v48 = vld [vmem:[#allocation2 + $0x140] ss:$8 sps:$4 sm:$0xff]   ;;  %v2412_v51 = vld [vmem:[#allocation2 + $0x164] ss:$8 sps:$4 sm:$0xff]   ;;  %v2415_v53 = vld [vmem:[#allocation2 + $0x174] ss:$8 sps:$4 sm:$0xff]  }
  0x37   :  { %v2410_v52 = vld [vmem:[#allocation2 + $0x160] ss:$8 sps:$4 sm:$0xff]   ;;  %v2413_v54 = vld [vmem:[#allocation2 + $0x170] ss:$8 sps:$4 sm:$0xff]   ;;  %v2418_v55 = vld [vmem:[#allocation2 + $0x184] ss:$8 sps:$4 sm:$0xff]  }
  0x38   :  { %885 = vmatpush1.bf16.msra.mxu0 %v2358_v9  ;;  %v2416_v56 = vld [vmem:[#allocation2 + $0x180] ss:$8 sps:$4 sm:$0xff]   ;;  %v2421_v57 = vld [vmem:[#allocation2 + $0x194] ss:$8 sps:$4 sm:$0xff]   ;;  %v2419_v58 = vld [vmem:[#allocation2 + $0x190] ss:$8 sps:$4 sm:$0xff]  }
  0x39   :  { %886 = vmatprep.subr.bf16.mxu0 %v2359_v10  ;;  %v2424_v59 = vld [vmem:[#allocation2 + $0x1a4] ss:$8 sps:$4 sm:$0xff]   ;;  %v2422_v60 = vld [vmem:[#allocation2 + $0x1a0] ss:$8 sps:$4 sm:$0xff]   ;;  %v2427_v61 = vld [vmem:[#allocation2 + $0x1b4] ss:$8 sps:$4 sm:$0xff]   ;;  %v2060_v10 = vcombine.low %v2653_v36, %v2658_v37 }
  0x3a   :  { %v2425_v62 = vld [vmem:[#allocation2 + $0x1b0] ss:$8 sps:$4 sm:$0xff]   ;;  %v2430_v63 = vld [vmem:[#allocation2 + $0x1c4] ss:$8 sps:$4 sm:$0xff]   ;;  %v2428_v0 = vld [vmem:[#allocation2 + $0x1c0] ss:$8 sps:$4 sm:$0xff]  }
  0x3b   :  { %v2433_v1 = vld [vmem:[#allocation2 + $0x1d4] ss:$8 sps:$4 sm:$0xff]   ;;  %v2431_v2 = vld [vmem:[#allocation2 + $0x1d0] ss:$8 sps:$4 sm:$0xff]   ;;  %v2436_v3 = vld [vmem:[#allocation2 + $0x1e4] ss:$8 sps:$4 sm:$0xff]  }
  0x3c   :  { %887 = vmatpush1.bf16.msra.mxu0 %v2361_v11  ;;  %v2434_v4 = vld [vmem:[#allocation2 + $0x1e0] ss:$8 sps:$4 sm:$0xff]   ;;  %v2439_v5 = vld [vmem:[#allocation2 + $0x1f4] ss:$8 sps:$4 sm:$0xff]   ;;  %v2437_v6 = vld [vmem:[#allocation2 + $0x1f0] ss:$8 sps:$4 sm:$0xff]  }
  0x3d   :  { %888 = vmatprep.subr.bf16.mxu0 %v2362_v12  ;;  %v2442_v7 = vld [vmem:[#allocation2 + $0x204] ss:$8 sps:$4 sm:$0xff]   ;;  %v2665_v8 = vld [vmem:[%s2776_s0 + $0x10] sm:$0xff]  ;;  %v2440_v11 = vld [vmem:[#allocation2 + $0x200] ss:$8 sps:$4 sm:$0xff]  }
  0x3e   :  { %v2670_v9 = vld [vmem:[%s2776_s0 + $0x30] sm:$0xff]  ;;  %v1054_v14 = vld [vmem:[#allocation4] sm:$0xff] }
  0x3f   :  { %v2063_v12 = vcombine.high %v2665_v8, %v2670_v9  ;;  %v2445_v13 = vld [vmem:[#allocation2 + $0x214] ss:$8 sps:$4 sm:$0xff]   ;;  %v1058_v15 = vld [vmem:[#allocation4 + $0x20] sm:$0xff] }
  0x40   :  { %889 = vmatpush1.bf16.msra.mxu0 %v2364_v16  ;;  %v1062_v16 = vld [vmem:[#allocation4 + $0x40] sm:$0xff] }
  0x41   :  { %890 = vmatprep.subr.bf16.mxu0 %v2365_v17  ;;  %v2443_v17 = vld [vmem:[#allocation2 + $0x210] ss:$8 sps:$4 sm:$0xff]   ;;  %v1090_v36 = vld [vmem:[#allocation4 + $0x120] sm:$0xff] }
  0x44   :  { %891 = vmatpush1.bf16.msra.mxu0 %v2367_v18  ;;  %v2195_v18 = vcombine.high %v1054_v14, %v1058_v15 }
  0x45   :  { %892 = vmatprep.subr.bf16.mxu0 %v2368_v19  ;;  %v2194_v19 = vcombine.low %v1054_v14, %v1058_v15  ;;  %v2475_v14 = vld [vmem:[#allocation2 + $0x2b4] ss:$8 sps:$4 sm:$0xff]   ;;  %v1142_v15 = vld [vmem:[#allocation4 + $0x2c0] sm:$0xff] }
  0x46   :  { %1864 = vmatprep.subr.bf16.mxu1 %v2195_v18  ;;  %v2473_v18 = vld [vmem:[#allocation2 + $0x2b0] ss:$8 sps:$4 sm:$0xff]  }
  0x47   :  { %1865 = vmatpush1.bf16.msra.mxu1 %v2194_v19 }
  0x48   :  { %893 = vmatpush1.bf16.msra.mxu0 %v2370_v20  ;;  %v1066_v20 = vld [vmem:[#allocation4 + $0x60] sm:$0xff] }
  0x49   :  { %894 = vmatprep.subr.bf16.mxu0 %v2371_v21  ;;  %v2448_v21 = vld [vmem:[#allocation2 + $0x224] ss:$8 sps:$4 sm:$0xff]  }
  0x4c   :  { %895 = vmatpush1.bf16.msra.mxu0 %v2373_v22  ;;  %v2203_v22 = vcombine.high %v1062_v16, %v1066_v20 }
  0x4d   :  { %896 = vmatprep.subr.bf16.mxu0 %v2374_v23  ;;  %v1070_v23 = vld [vmem:[#allocation4 + $0x80] sm:$0xff] }
  0x4e   :  { %1866 = vmatprep.subr.bf16.mxu1 %v2203_v22  ;;  %v1154_v22 = vld [vmem:[#allocation4 + $0x320] sm:$0xff] }
  0x50   :  { %897 = vmatpush1.bf16.msra.mxu0 %v2376_v24  ;;  %v1074_v24 = vld [vmem:[#allocation4 + $0xa0] sm:$0xff] }
  0x51   :  { %898 = vmatprep.subr.bf16.mxu0 %v2377_v25  ;;  %v2202_v25 = vcombine.low %v1062_v16, %v1066_v20  ;;  %v1146_v16 = vld [vmem:[#allocation4 + $0x2e0] sm:$0xff] }
  0x52   :  { %v2283_v19 = vcombine.high %v1142_v15, %v1146_v16  ;;  %v2478_v20 = vld [vmem:[#allocation2 + $0x2c4] ss:$8 sps:$4 sm:$0xff]  }
  0x53   :  { %1867 = vmatpush1.bf16.msra.mxu1 %v2202_v25 }
  0x54   :  { %899 = vmatpush1.bf16.msra.mxu0 %v2379_v26  ;;  %v2446_v26 = vld [vmem:[#allocation2 + $0x220] ss:$8 sps:$4 sm:$0xff]  }
  0x55   :  { %900 = vmatprep.subr.bf16.mxu0 %v2380_v27  ;;  %v2211_v27 = vcombine.high %v1070_v23, %v1074_v24 }
  0x57   :  { %1868 = vmatprep.subr.bf16.mxu1 %v2211_v27  ;;  %v1158_v27 = vld [vmem:[#allocation4 + $0x340] sm:$0xff] }
  0x58   :  { %901 = vmatpush1.bf16.msra.mxu0 %v2382_v28  ;;  %v2451_v28 = vld [vmem:[#allocation2 + $0x234] ss:$8 sps:$4 sm:$0xff]  }
  0x59   :  { %902 = vmatprep.subr.bf16.mxu0 %v2383_v29  ;;  %v1078_v29 = vld [vmem:[#allocation4 + $0xc0] sm:$0xff] }
  0x5c   :  { %903 = vmatpush1.bf16.msra.mxu0 %v2385_v30  ;;  %v1082_v30 = vld [vmem:[#allocation4 + $0xe0] sm:$0xff] }
  0x5d   :  { %904 = vmatprep.subr.bf16.mxu0 %v2386_v31  ;;  %v2210_v31 = vcombine.low %v1070_v23, %v1074_v24  ;;  %v2218_v37 = vcombine.low %v1078_v29, %v1082_v30  ;;  %v2282_v23 = vcombine.low %v1142_v15, %v1146_v16  ;;  %v2476_v24 = vld [vmem:[#allocation2 + $0x2c0] ss:$8 sps:$4 sm:$0xff]  }
  0x5e   :  { %v1178_v15 = vld [vmem:[#allocation4 + $0x3e0] sm:$0xff] }
  0x5f   :  { %1869 = vmatpush1.bf16.msra.mxu1 %v2210_v31 }
  0x60   :  { %905 = vmatpush1.bf16.msra.mxu0 %v2388_v32  ;;  %v2449_v32 = vld [vmem:[#allocation2 + $0x230] ss:$8 sps:$4 sm:$0xff]  }
  0x61   :  { %906 = vmatprep.subr.bf16.mxu0 %v2389_v33  ;;  %v2219_v33 = vcombine.high %v1078_v29, %v1082_v30  ;;  %v2479_v30 = vld [vmem:[#allocation2 + $0x2d0] ss:$8 sps:$4 sm:$0xff]  }
  0x63   :  { %1870 = vmatprep.subr.bf16.mxu1 %v2219_v33 }
  0x64   :  { %907 = vmatpush1.bf16.msra.mxu0 %v2391_v34  ;;  %v2454_v34 = vld [vmem:[#allocation2 + $0x244] ss:$8 sps:$4 sm:$0xff]   ;;  %1871 = vmatpush1.bf16.msra.mxu1 %v2218_v37 }
  0x65   :  { %919 = vmatprep.subr.bf16.mxu0 %v2394_v35  ;;  %v1086_v35 = vld [vmem:[#allocation4 + $0x100] sm:$0xff] }
  0x66   :  { %v2490_v37 = vld [vmem:[#allocation2 + $0x304] ss:$8 sps:$4 sm:$0xff]  }
  0x67   :  { %909 = vmatmul.mubr.bf16.vlgmr.msra.gmra.mrb[0].mxu0 %v2058_v38  ;;  %v2452_v38 = vld [vmem:[#allocation2 + $0x240] ss:$8 sps:$4 sm:$0xff]  }
  0x68   :  { %920 = vmatpush1.bf16.msra.mxu0 %v2392_v39  ;;  %951 = vmatprep.mubr.bf16.mxu0 %v2061_v40  ;;  %v2227_v39 = vcombine.high %v1086_v35, %v1090_v36  ;;  %v2457_v40 = vld [vmem:[#allocation2 + $0x254] ss:$8 sps:$4 sm:$0xff]  }
  0x69   :  { %921 = vmatprep.subr.bf16.mxu0 %v2397_v41  ;;  %v1094_v41 = vld [vmem:[#allocation4 + $0x140] sm:$0xff] }
  0x6a   :  { %1872 = vmatprep.subr.bf16.mxu1 %v2227_v39  ;;  %v2684_v39 = vld [vmem:[%s2776_s0 + $0x38] sm:$0xff] }
  0x6c   :  { %922 = vmatpush1.bf16.msra.mxu0 %v2395_v42  ;;  %v1098_v42 = vld [vmem:[#allocation4 + $0x160] sm:$0xff] }
  0x6d   :  { %923 = vmatprep.subr.bf16.mxu0 %v2400_v43  ;;  %v2226_v43 = vcombine.low %v1086_v35, %v1090_v36  ;;  %v2487_v35 = vld [vmem:[#allocation2 + $0x2f4] ss:$8 sps:$4 sm:$0xff]   ;;  %v2485_v36 = vld [vmem:[#allocation2 + $0x2f0] ss:$8 sps:$4 sm:$0xff]  }
  0x6f   :  { %1873 = vmatpush1.bf16.msra.mxu1 %v2226_v43  ;;  %v2493_v43 = vld [vmem:[#allocation2 + $0x314] ss:$8 sps:$4 sm:$0xff]  }
  0x70   :  { %924 = vmatpush1.bf16.msra.mxu0 %v2398_v44  ;;  %v2455_v44 = vld [vmem:[#allocation2 + $0x250] ss:$8 sps:$4 sm:$0xff]  }
  0x71   :  { %925 = vmatprep.subr.bf16.mxu0 %v2403_v45  ;;  %v2235_v45 = vcombine.high %v1094_v41, %v1098_v42 }
  0x73   :  { %1874 = vmatprep.subr.bf16.mxu1 %v2235_v45  ;;  %v2496_v45 = vld [vmem:[#allocation2 + $0x324] ss:$8 sps:$4 sm:$0xff]  }
  0x74   :  { %926 = vmatpush1.bf16.msra.mxu0 %v2401_v46  ;;  %v2460_v46 = vld [vmem:[#allocation2 + $0x264] ss:$8 sps:$4 sm:$0xff]  }
  0x75   :  { %927 = vmatprep.subr.bf16.mxu0 %v2406_v47  ;;  %v1102_v47 = vld [vmem:[#allocation4 + $0x180] sm:$0xff] }
  0x78   :  { %928 = vmatpush1.bf16.msra.mxu0 %v2404_v48  ;;  %v1106_v48 = vld [vmem:[#allocation4 + $0x1a0] sm:$0xff] }
  0x79   :  { %929 = vmatprep.subr.bf16.mxu0 %v2409_v49  ;;  %v2234_v49 = vcombine.low %v1094_v41, %v1098_v42  ;;  %v2488_v41 = vld [vmem:[#allocation2 + $0x300] ss:$8 sps:$4 sm:$0xff]  }
  0x7b   :  { %1875 = vmatpush1.bf16.msra.mxu1 %v2234_v49  ;;  %v2505_v49 = vld [vmem:[#allocation2 + $0x354] ss:$8 sps:$4 sm:$0xff]  }
  0x7c   :  { %930 = vmatpush1.bf16.msra.mxu0 %v2407_v50  ;;  %v2458_v50 = vld [vmem:[#allocation2 + $0x260] ss:$8 sps:$4 sm:$0xff]  }
  0x7d   :  { %931 = vmatprep.subr.bf16.mxu0 %v2412_v51  ;;  %v2243_v51 = vcombine.high %v1102_v47, %v1106_v48 }
  0x7f   :  { %1876 = vmatprep.subr.bf16.mxu1 %v2243_v51  ;;  %v2508_v51 = vld [vmem:[#allocation2 + $0x364] ss:$8 sps:$4 sm:$0xff]  }
  0x80   :  { %932 = vmatpush1.bf16.msra.mxu0 %v2410_v52  ;;  %v2463_v52 = vld [vmem:[#allocation2 + $0x274] ss:$8 sps:$4 sm:$0xff]  }
  0x81   :  { %933 = vmatprep.subr.bf16.mxu0 %v2415_v53  ;;  %v1110_v53 = vld [vmem:[#allocation4 + $0x1c0] sm:$0xff] }
  0x84   :  { %934 = vmatpush1.bf16.msra.mxu0 %v2413_v54  ;;  %v1114_v54 = vld [vmem:[#allocation4 + $0x1e0] sm:$0xff] }
  0x85   :  { %935 = vmatprep.subr.bf16.mxu0 %v2418_v55  ;;  %v2242_v55 = vcombine.low %v1102_v47, %v1106_v48  ;;  %v2499_v47 = vld [vmem:[#allocation2 + $0x334] ss:$8 sps:$4 sm:$0xff]   ;;  %v2497_v48 = vld [vmem:[#allocation2 + $0x330] ss:$8 sps:$4 sm:$0xff]  }
  0x87   :  { %1877 = vmatpush1.bf16.msra.mxu1 %v2242_v55  ;;  %v2514_v55 = vld [vmem:[#allocation2 + $0x384] ss:$8 sps:$4 sm:$0xff]  }
  0x88   :  { %936 = vmatpush1.bf16.msra.mxu0 %v2416_v56  ;;  %v2461_v56 = vld [vmem:[#allocation2 + $0x270] ss:$8 sps:$4 sm:$0xff]  }
  0x89   :  { %937 = vmatprep.subr.bf16.mxu0 %v2421_v57  ;;  %v2251_v57 = vcombine.high %v1110_v53, %v1114_v54 }
  0x8b   :  { %1878 = vmatprep.subr.bf16.mxu1 %v2251_v57  ;;  %v2517_v57 = vld [vmem:[#allocation2 + $0x394] ss:$8 sps:$4 sm:$0xff]  }
  0x8c   :  { %938 = vmatpush1.bf16.msra.mxu0 %v2419_v58  ;;  %v2466_v58 = vld [vmem:[#allocation2 + $0x284] ss:$8 sps:$4 sm:$0xff]  }
  0x8d   :  { %939 = vmatprep.subr.bf16.mxu0 %v2424_v59  ;;  %v1118_v59 = vld [vmem:[#allocation4 + $0x200] sm:$0xff] }
  0x90   :  { %940 = vmatpush1.bf16.msra.mxu0 %v2422_v60  ;;  %v1122_v60 = vld [vmem:[#allocation4 + $0x220] sm:$0xff] }
  0x91   :  { %941 = vmatprep.subr.bf16.mxu0 %v2427_v61  ;;  %v2250_v61 = vcombine.low %v1110_v53, %v1114_v54  ;;  %v2511_v53 = vld [vmem:[#allocation2 + $0x374] ss:$8 sps:$4 sm:$0xff]   ;;  %v2509_v54 = vld [vmem:[#allocation2 + $0x370] ss:$8 sps:$4 sm:$0xff]  }
  0x93   :  { %1879 = vmatpush1.bf16.msra.mxu1 %v2250_v61  ;;  %v2523_v61 = vld [vmem:[#allocation2 + $0x3b4] ss:$8 sps:$4 sm:$0xff]  }
  0x94   :  { %942 = vmatpush1.bf16.msra.mxu0 %v2425_v62  ;;  %v2464_v62 = vld [vmem:[#allocation2 + $0x280] ss:$8 sps:$4 sm:$0xff]  }
  0x95   :  { %943 = vmatprep.subr.bf16.mxu0 %v2430_v63  ;;  %v2259_v63 = vcombine.high %v1118_v59, %v1122_v60 }
  0x97   :  { %1880 = vmatprep.subr.bf16.mxu1 %v2259_v63  ;;  %v2526_v63 = vld [vmem:[#allocation2 + $0x3c4] ss:$8 sps:$4 sm:$0xff]  }
  0x98   :  { %944 = vmatpush1.bf16.msra.mxu0 %v2428_v0  ;;  %v2469_v0 = vld [vmem:[#allocation2 + $0x294] ss:$8 sps:$4 sm:$0xff]  }
  0x99   :  { %945 = vmatprep.subr.bf16.mxu0 %v2433_v1  ;;  %v1126_v1 = vld [vmem:[#allocation4 + $0x240] sm:$0xff] }
  0x9c   :  { %946 = vmatpush1.bf16.msra.mxu0 %v2431_v2  ;;  %v1130_v2 = vld [vmem:[#allocation4 + $0x260] sm:$0xff] }
  0x9d   :  { %947 = vmatprep.subr.bf16.mxu0 %v2436_v3  ;;  %v2258_v3 = vcombine.low %v1118_v59, %v1122_v60  ;;  %v2520_v59 = vld [vmem:[#allocation2 + $0x3a4] ss:$8 sps:$4 sm:$0xff]   ;;  %v2518_v60 = vld [vmem:[#allocation2 + $0x3a0] ss:$8 sps:$4 sm:$0xff]  }
  0x9f   :  { %1881 = vmatpush1.bf16.msra.mxu1 %v2258_v3  ;;  %v2532_v3 = vld [vmem:[#allocation2 + $0x3e4] ss:$8 sps:$4 sm:$0xff]  }
  0xa0   :  { %948 = vmatpush1.bf16.msra.mxu0 %v2434_v4  ;;  %v2467_v4 = vld [vmem:[#allocation2 + $0x290] ss:$8 sps:$4 sm:$0xff]  }
  0xa1   :  { %949 = vmatprep.subr.bf16.mxu0 %v2439_v5  ;;  %v2267_v5 = vcombine.high %v1126_v1, %v1130_v2 }
  0xa3   :  { %1882 = vmatprep.subr.bf16.mxu1 %v2267_v5  ;;  %v2535_v5 = vld [vmem:[#allocation2 + $0x3f4] ss:$8 sps:$4 sm:$0xff]  }
  0xa4   :  { %950 = vmatpush1.bf16.msra.mxu0 %v2437_v6  ;;  %v2472_v6 = vld [vmem:[#allocation2 + $0x2a4] ss:$8 sps:$4 sm:$0xff]  }
  0xa5   :  { %962 = vmatprep.subr.bf16.mxu0 %v2442_v7  ;;  %v1134_v7 = vld [vmem:[#allocation4 + $0x280] sm:$0xff] }
  0xa7   :  { %952 = vmatmul.mubr.bf16.vlgmr.msra.gmra.mrb[0].mxu0 %v2060_v10  ;;  %v1138_v10 = vld [vmem:[#allocation4 + $0x2a0] sm:$0xff] }
  0xa8   :  { %963 = vmatpush1.bf16.msra.mxu0 %v2440_v11  ;;  %994 = vmatprep.mubr.bf16.mxu0 %v2063_v12  ;;  %v2266_v11 = vcombine.low %v1126_v1, %v1130_v2  ;;  %v2470_v12 = vld [vmem:[#allocation2 + $0x2a0] ss:$8 sps:$4 sm:$0xff]   ;;  %v2529_v1 = vld [vmem:[#allocation2 + $0x3d4] ss:$8 sps:$4 sm:$0xff]   ;;  %v2527_v2 = vld [vmem:[#allocation2 + $0x3d0] ss:$8 sps:$4 sm:$0xff]  }
  0xa9   :  { %964 = vmatprep.subr.bf16.mxu0 %v2445_v13  ;;  %v2275_v13 = vcombine.high %v1134_v7, %v1138_v10 }
  0xaa   :  { %1883 = vmatpush1.bf16.msra.mxu1 %v2266_v11  ;;  %v1170_v11 = vld [vmem:[#allocation4 + $0x3a0] sm:$0xff] }
  0xab   :  { %1884 = vmatprep.subr.bf16.mxu1 %v2275_v13 }
  0xac   :  { %965 = vmatpush1.bf16.msra.mxu0 %v2443_v17  ;;  %v2274_v17 = vcombine.low %v1134_v7, %v1138_v10  ;;  %v1166_v10 = vld [vmem:[#allocation4 + $0x380] sm:$0xff] }
  0xad   :  { %966 = vmatprep.subr.bf16.mxu0 %v2448_v21  ;;  %v1150_v21 = vld [vmem:[#allocation4 + $0x300] sm:$0xff]  ;;  %v2306_v13 = vcombine.low %v1166_v10, %v1170_v11 }
  0xae   :  { %1885 = vmatpush1.bf16.msra.mxu1 %v2274_v17  ;;  %v2291_v25 = vcombine.high %v1150_v21, %v1154_v22  ;;  %v2290_v29 = vcombine.low %v1150_v21, %v1154_v22  ;;  %v186_v22 = vlaneseq }
  0xaf   :  { %1886 = vmatprep.subr.bf16.mxu1 %v2283_v19  ;;  %v1059_v19 = vld [vmem:[#allocation4 + $0x28] sm:$0xff] }
  0xb0   :  { %967 = vmatpush1.bf16.msra.mxu0 %v2446_v26  ;;  %v2481_v26 = vld [vmem:[#allocation2 + $0x2d4] ss:$8 sps:$4 sm:$0xff]  }
  0xb1   :  { %968 = vmatprep.subr.bf16.mxu0 %v2451_v28  ;;  %v1162_v28 = vld [vmem:[#allocation4 + $0x360] sm:$0xff] }
  0xb2   :  { %1887 = vmatpush1.bf16.msra.mxu1 %v2282_v23  ;;  %v2299_v31 = vcombine.high %v1158_v27, %v1162_v28  ;;  %v2298_v33 = vcombine.low %v1158_v27, %v1162_v28  ;;  %v2692_v23 = vshrl.u32 %v186_v22, 7  ;;  %v1151_v22 = vld [vmem:[#allocation4 + $0x308] sm:$0xff] }
  0xb3   :  { %1888 = vmatprep.subr.bf16.mxu1 %v2291_v25  ;;  %v184_v25 = vld [vmem:[%s2777_s1] sm:$0x3] }
  0xb4   :  { %969 = vmatpush1.bf16.msra.mxu0 %v2449_v32  ;;  %v2484_v32 = vld [vmem:[#allocation2 + $0x2e4] ss:$8 sps:$4 sm:$0xff]  }
  0xb5   :  { %970 = vmatprep.subr.bf16.mxu0 %v2454_v34  ;;  %v2482_v34 = vld [vmem:[#allocation2 + $0x2e0] ss:$8 sps:$4 sm:$0xff]  }
  0xb6   :  { %1889 = vmatpush1.bf16.msra.mxu1 %v2290_v29 }
  0xb7   :  { %1890 = vmatprep.subr.bf16.mxu1 %v2299_v31 }
  0xb8   :  { %971 = vmatpush1.bf16.msra.mxu0 %v2452_v38  ;;  %v2679_v38 = vld [vmem:[%s2776_s0 + $0x18] sm:$0xff] }
  0xb9   :  { %972 = vmatprep.subr.bf16.mxu0 %v2457_v40  ;;  %v2062_v40 = vcombine.low %v2665_v8, %v2670_v9  ;;  %v2065_v42 = vcombine.high %v2679_v38, %v2684_v39  ;;  %v2502_v8 = vld [vmem:[#allocation2 + $0x344] ss:$8 sps:$4 sm:$0xff]   ;;  %v2500_v9 = vld [vmem:[#allocation2 + $0x340] ss:$8 sps:$4 sm:$0xff]   ;;  %v2064_v7 = vcombine.low %v2679_v38, %v2684_v39 }
  0xba   :  { %1891 = vmatpush1.bf16.msra.mxu1 %v2298_v33 }
  0xbc   :  { %973 = vmatpush1.bf16.msra.mxu0 %v2455_v44  ;;  %v2491_v44 = vld [vmem:[#allocation2 + $0x310] ss:$8 sps:$4 sm:$0xff]  }
  0xbd   :  { %974 = vmatprep.subr.bf16.mxu0 %v2460_v46  ;;  %v2494_v46 = vld [vmem:[#allocation2 + $0x320] ss:$8 sps:$4 sm:$0xff]  }
  0xc0   :  { %975 = vmatpush1.bf16.msra.mxu0 %v2458_v50  ;;  %v2503_v50 = vld [vmem:[#allocation2 + $0x350] ss:$8 sps:$4 sm:$0xff]  }
  0xc1   :  { %976 = vmatprep.subr.bf16.mxu0 %v2463_v52  ;;  %v2506_v52 = vld [vmem:[#allocation2 + $0x360] ss:$8 sps:$4 sm:$0xff]  }
  0xc4   :  { %977 = vmatpush1.bf16.msra.mxu0 %v2461_v56  ;;  %v2512_v56 = vld [vmem:[#allocation2 + $0x380] ss:$8 sps:$4 sm:$0xff]  }
  0xc5   :  { %978 = vmatprep.subr.bf16.mxu0 %v2466_v58  ;;  %v2515_v58 = vld [vmem:[#allocation2 + $0x390] ss:$8 sps:$4 sm:$0xff]  }
  0xc8   :  { %979 = vmatpush1.bf16.msra.mxu0 %v2464_v62  ;;  %v2521_v62 = vld [vmem:[#allocation2 + $0x3b0] ss:$8 sps:$4 sm:$0xff]  }
  0xc9   :  { %980 = vmatprep.subr.bf16.mxu0 %v2469_v0  ;;  %v2524_v0 = vld [vmem:[#allocation2 + $0x3c0] ss:$8 sps:$4 sm:$0xff]  }
  0xcc   :  { %981 = vmatpush1.bf16.msra.mxu0 %v2467_v4  ;;  %v2530_v4 = vld [vmem:[#allocation2 + $0x3e0] ss:$8 sps:$4 sm:$0xff]  }
  0xcd   :  { %982 = vmatprep.subr.bf16.mxu0 %v2472_v6  ;;  %v2533_v6 = vld [vmem:[#allocation2 + $0x3f0] ss:$8 sps:$4 sm:$0xff]  }
  0xd0   :  { %983 = vmatpush1.bf16.msra.mxu0 %v2470_v12  ;;  %v2307_v12 = vcombine.high %v1166_v10, %v1170_v11  ;;  %v1127_v10 = vld [vmem:[#allocation4 + $0x248] sm:$0xff] }
  0xd1   :  { %984 = vmatprep.subr.bf16.mxu0 %v2475_v14  ;;  %v1174_v14 = vld [vmem:[#allocation4 + $0x3c0] sm:$0xff]  ;;  %v1131_v11 = vld [vmem:[#allocation4 + $0x268] sm:$0xff] }
  0xd2   :  { %1892 = vmatprep.subr.bf16.mxu1 %v2307_v12  ;;  %v2315_v16 = vcombine.high %v1174_v14, %v1178_v15  ;;  %v2314_v17 = vcombine.low %v1174_v14, %v1178_v15  ;;  %v1135_v14 = vld [vmem:[#allocation4 + $0x288] sm:$0xff] }
  0xd3   :  { %1893 = vmatpush1.bf16.msra.mxu1 %v2306_v13  ;;  %v2269_v13 = vcombine.high %v1127_v10, %v1131_v11  ;;  %v1139_v15 = vld [vmem:[#allocation4 + $0x2a8] sm:$0xff] }
  0xd4   :  { %985 = vmatpush1.bf16.msra.mxu0 %v2473_v18  ;;  %1894 = vmatprep.subr.bf16.mxu1 %v2315_v16  ;;  %v1055_v18 = vld [vmem:[#allocation4 + $0x8] sm:$0xff]  ;;  %v2268_v16 = vcombine.low %v1127_v10, %v1131_v11  ;;  %v1120_v11 = vld [vmem:[#allocation4 + $0x210] sm:$0xff] }
  0xd5   :  { %986 = vmatprep.subr.bf16.mxu0 %v2478_v20  ;;  %v2197_v20 = vcombine.high %v1055_v18, %v1059_v19  ;;  %v2196_v21 = vcombine.low %v1055_v18, %v1059_v19  ;;  %v1143_v18 = vld [vmem:[#allocation4 + $0x2c8] sm:$0xff] }
  0xd6   :  { %v1147_v19 = vld [vmem:[#allocation4 + $0x2e8] sm:$0xff] }
  0xd7   :  { %1895 = vmatpush1.bf16.msra.mxu1 %v2314_v17  ;;  %v2277_v17 = vcombine.high %v1135_v14, %v1139_v15 }
  0xd8   :  { %987 = vmatpush1.bf16.msra.mxu0 %v2476_v24  ;;  %1907 = vmatprep.subr.bf16.mxu1 %v2197_v20  ;;  %v188_v24 = vsub.s32 0, %v2692_v23  ;;  %v2276_v20 = vcombine.low %v1135_v14, %v1139_v15  ;;  %v1128_v15 = vld [vmem:[#allocation4 + $0x250] sm:$0xff] }
  0xd9   :  { %988 = vmatprep.subr.bf16.mxu0 %v2481_v26  ;;  %v192_v26 = vsub.s32 1, %v2692_v23 }
  0xda   :  { %v189_v27 = vrot.slane %v184_v25, %v188_v24 }
  0xdb   :  { %v193_v28 = vrot.slane %v184_v25, %v192_v26  ;;  %v1155_v25 = vld [vmem:[#allocation4 + $0x328] sm:$0xff] }
  0xdc   :  { %989 = vmatpush1.bf16.msra.mxu0 %v2479_v30 }
  0xdd   :  { %990 = vmatprep.subr.bf16.mxu0 %v2484_v32 }
  0xe0   :  { %991 = vmatpush1.bf16.msra.mxu0 %v2482_v34 }
  0xe1   :  { %992 = vmatprep.subr.bf16.mxu0 %v2487_v35 }
  0xe4   :  { %993 = vmatpush1.bf16.msra.mxu0 %v2485_v36 }
  0xe5   :  { %1005 = vmatprep.subr.bf16.mxu0 %v2490_v37 }
  0xe7   :  { %995 = vmatmul.mubr.bf16.vlgmr.msra.gmra.mrb[0].mxu0 %v2062_v40 }
  0xe8   :  { %1006 = vmatpush1.bf16.msra.mxu0 %v2488_v41  ;;  %1037 = vmatprep.mubr.bf16.mxu0 %v2065_v42  ;;  %v1063_v41 = vld [vmem:[#allocation4 + $0x48] sm:$0xff] }
  0xe9   :  { %1007 = vmatprep.subr.bf16.mxu0 %v2493_v43  ;;  %v1067_v42 = vld [vmem:[#allocation4 + $0x68] sm:$0xff] }
  0xec   :  { %1008 = vmatpush1.bf16.msra.mxu0 %v2491_v44 }
  0xed   :  { %1009 = vmatprep.subr.bf16.mxu0 %v2496_v45  ;;  %v2205_v45 = vcombine.high %v1063_v41, %v1067_v42 }
  0xf0   :  { %1010 = vmatpush1.bf16.msra.mxu0 %v2494_v46  ;;  %v1071_v46 = vld [vmem:[#allocation4 + $0x88] sm:$0xff] }
  0xf1   :  { %1011 = vmatprep.subr.bf16.mxu0 %v2499_v47  ;;  %v1075_v47 = vld [vmem:[#allocation4 + $0xa8] sm:$0xff] }
  0xf4   :  { %1012 = vmatpush1.bf16.msra.mxu0 %v2497_v48  ;;  %v2204_v48 = vcombine.low %v1063_v41, %v1067_v42  ;;  %v1056_v41 = vld [vmem:[#allocation4 + $0x10] sm:$0xff] }
  0xf5   :  { %1013 = vmatprep.subr.bf16.mxu0 %v2502_v8  ;;  %v2213_v8 = vcombine.high %v1071_v46, %v1075_v47  ;;  %v1060_v42 = vld [vmem:[#allocation4 + $0x30] sm:$0xff] }
  0xf8   :  { %1014 = vmatpush1.bf16.msra.mxu0 %v2500_v9  ;;  %v1079_v9 = vld [vmem:[#allocation4 + $0xc8] sm:$0xff] }
  0xf9   :  { %1015 = vmatprep.subr.bf16.mxu0 %v2505_v49  ;;  %v1083_v49 = vld [vmem:[#allocation4 + $0xe8] sm:$0xff] }
  0xfc   :  { %1016 = vmatpush1.bf16.msra.mxu0 %v2503_v50  ;;  %v2212_v50 = vcombine.low %v1071_v46, %v1075_v47  ;;  %v2199_v46 = vcombine.high %v1056_v41, %v1060_v42  ;;  %v1064_v47 = vld [vmem:[#allocation4 + $0x50] sm:$0xff] }
  0xfd   :  { %1017 = vmatprep.subr.bf16.mxu0 %v2508_v51  ;;  %v2221_v51 = vcombine.high %v1079_v9, %v1083_v49 }
 0x100   :  { %1018 = vmatpush1.bf16.msra.mxu0 %v2506_v52  ;;  %v1087_v52 = vld [vmem:[#allocation4 + $0x108] sm:$0xff] }
 0x101   :  { %1019 = vmatprep.subr.bf16.mxu0 %v2511_v53  ;;  %v1091_v53 = vld [vmem:[#allocation4 + $0x128] sm:$0xff] }
 0x104   :  { %1020 = vmatpush1.bf16.msra.mxu0 %v2509_v54  ;;  %v2220_v54 = vcombine.low %v1079_v9, %v1083_v49  ;;  %v1072_v49 = vld [vmem:[#allocation4 + $0x90] sm:$0xff] }
 0x105   :  { %1021 = vmatprep.subr.bf16.mxu0 %v2514_v55  ;;  %v2229_v55 = vcombine.high %v1087_v52, %v1091_v53 }
 0x108   :  { %1022 = vmatpush1.bf16.msra.mxu0 %v2512_v56  ;;  %v1095_v56 = vld [vmem:[#allocation4 + $0x148] sm:$0xff] }
 0x109   :  { %1023 = vmatprep.subr.bf16.mxu0 %v2517_v57  ;;  %v1099_v57 = vld [vmem:[#allocation4 + $0x168] sm:$0xff] }
 0x10c   :  { %1024 = vmatpush1.bf16.msra.mxu0 %v2515_v58  ;;  %v2228_v58 = vcombine.low %v1087_v52, %v1091_v53  ;;  %v1080_v53 = vld [vmem:[#allocation4 + $0xd0] sm:$0xff] }
 0x10d   :  { %1025 = vmatprep.subr.bf16.mxu0 %v2520_v59  ;;  %v2237_v59 = vcombine.high %v1095_v56, %v1099_v57 }
 0x110   :  { %1026 = vmatpush1.bf16.msra.mxu0 %v2518_v60  ;;  %v1103_v60 = vld [vmem:[#allocation4 + $0x188] sm:$0xff] }
 0x111   :  { %1027 = vmatprep.subr.bf16.mxu0 %v2523_v61  ;;  %v1107_v61 = vld [vmem:[#allocation4 + $0x1a8] sm:$0xff] }
 0x114   :  { %1028 = vmatpush1.bf16.msra.mxu0 %v2521_v62  ;;  %v2236_v62 = vcombine.low %v1095_v56, %v1099_v57  ;;  %v1088_v57 = vld [vmem:[#allocation4 + $0x110] sm:$0xff] }
 0x115   :  { %1029 = vmatprep.subr.bf16.mxu0 %v2526_v63  ;;  %v2245_v63 = vcombine.high %v1103_v60, %v1107_v61 }
 0x118   :  { %1030 = vmatpush1.bf16.msra.mxu0 %v2524_v0  ;;  %v1111_v0 = vld [vmem:[#allocation4 + $0x1c8] sm:$0xff] }
 0x119   :  { %1031 = vmatprep.subr.bf16.mxu0 %v2529_v1  ;;  %v1115_v1 = vld [vmem:[#allocation4 + $0x1e8] sm:$0xff] }
 0x11c   :  { %1032 = vmatpush1.bf16.msra.mxu0 %v2527_v2  ;;  %v2244_v2 = vcombine.low %v1103_v60, %v1107_v61  ;;  %v1096_v61 = vld [vmem:[#allocation4 + $0x150] sm:$0xff] }
 0x11d   :  { %1033 = vmatprep.subr.bf16.mxu0 %v2532_v3  ;;  %v2253_v3 = vcombine.high %v1111_v0, %v1115_v1 }
 0x120   :  { %1034 = vmatpush1.bf16.msra.mxu0 %v2530_v4  ;;  %v1119_v4 = vld [vmem:[#allocation4 + $0x208] sm:$0xff] }
 0x121   :  { %1035 = vmatprep.subr.bf16.mxu0 %v2535_v5  ;;  %v1123_v5 = vld [vmem:[#allocation4 + $0x228] sm:$0xff] }
 0x122   :  { %v2260_v12 = vcombine.low %v1119_v4, %v1123_v5 }
 0x124   :  { %1036 = vmatpush1.bf16.msra.mxu0 %v2533_v6  ;;  %v2252_v6 = vcombine.low %v1111_v0, %v1115_v1  ;;  %v1104_v1 = vld [vmem:[#allocation4 + $0x190] sm:$0xff] }
 0x127   :  { %1038 = vmatmul.mubr.bf16.vlgmr.msra.gmra.mrb[0].mxu0 %v2064_v7  ;;  %v2261_v7 = vcombine.high %v1119_v4, %v1123_v5  ;;  %v1112_v5 = vld [vmem:[#allocation4 + $0x1d0] sm:$0xff] }
 0x1fa   :  { %v1039_v29 = vpop.f32.mrb[0].mxu0 }
 0x1fb   :  { %v2322_v30 = vadd.f32 %v1039_v29, %v189_v27  ;;  %v1041_v31 = vpop.f32.mrb[1].mxu0  ;;  %v1159_v29 = vld [vmem:[#allocation4 + $0x348] sm:$0xff] }
 0x1fc   :  { %v2323_v32 = vadd.f32 %v1041_v31, %v193_v28  ;;  %v1043_v33 = vpop.f32.mrb[2].mxu0  ;;  %v2292_v31 = vcombine.low %v1151_v22, %v1155_v25 }
 0x1fd   :  { %v2324_v34 = vadd.f32 %v1043_v33, %v189_v27  ;;  %v1045_v35 = vpop.f32.mrb[3].mxu0  ;;  %v1048_v37 = vmax.f32 %v2322_v30, 0.0  ;;  %v2284_v27 = vcombine.low %v1143_v18, %v1147_v19  ;;  %v1163_v30 = vld [vmem:[#allocation4 + $0x368] sm:$0xff] }
 0x1fe   :  { %v2325_v36 = vadd.f32 %v1045_v35, %v193_v28  ;;  %v1049_v39 = vmax.f32 %v2323_v32, 0.0  ;;  %v2293_v28 = vcombine.high %v1151_v22, %v1155_v25  ;;  %v2301_v32 = vcombine.high %v1159_v29, %v1163_v30  ;;  %v1167_v33 = vld [vmem:[#allocation4 + $0x388] sm:$0xff]  ;;  %v1144_v25 = vld [vmem:[#allocation4 + $0x2d0] sm:$0xff] }
 0x1ff   :  { %v1050_v38 = vmax.f32 %v2324_v34, 0.0  ;;  %v1171_v34 = vld [vmem:[#allocation4 + $0x3a8] sm:$0xff]  ;;  %v2300_v35 = vcombine.low %v1159_v29, %v1163_v30  ;;  %v1152_v30 = vld [vmem:[#allocation4 + $0x310] sm:$0xff] }
 0x200   :  { %v1051_v40 = vmax.f32 %v2325_v36, 0.0  ;;  %v2309_v36 = vcombine.high %v1167_v33, %v1171_v34 }
 0x201   :  { %v2703_v43 = vpack.c.bf16 %v1050_v38, %v1048_v37  ;;  %v1175_v37 = vld [vmem:[#allocation4 + $0x3c8] sm:$0xff] }
 0x202   :  { %v2705_v44 = vpack.c.bf16 %v1051_v40, %v1049_v39  ;;  %v1179_v38 = vld [vmem:[#allocation4 + $0x3e8] sm:$0xff]  ;;  %v2308_v39 = vcombine.low %v1167_v33, %v1171_v34  ;;  %v1160_v34 = vld [vmem:[#allocation4 + $0x350] sm:$0xff] }
 0x203   :  { %v2317_v40 = vcombine.high %v1175_v37, %v1179_v38 }
 0x204   :  { %1896 = vmatprep.mubr.bf16.mxu1 %v2705_v44 }
 0x205   :  { %1897 = vmatmul.mubr.bf16.vlgmr.msra.gmra.mrb[0].mxu1 %v2703_v43 }
 0x206   :  { %1908 = vmatpush1.bf16.msra.mxu1 %v2196_v21  ;;  %1939 = vmatprep.mubr.bf16.mxu1 %v2705_v44  ;;  %v2285_v21 = vcombine.high %v1143_v18, %v1147_v19  ;;  %v1136_v19 = vld [vmem:[#allocation4 + $0x290] sm:$0xff] }
 0x207   :  { %1909 = vmatprep.subr.bf16.mxu1 %v2205_v45  ;;  %v2316_v45 = vcombine.low %v1175_v37, %v1179_v38  ;;  %v1168_v38 = vld [vmem:[#allocation4 + $0x390] sm:$0xff] }
 0x20a   :  { %1910 = vmatpush1.bf16.msra.mxu1 %v2204_v48  ;;  %v1068_v48 = vld [vmem:[#allocation4 + $0x70] sm:$0xff] }
 0x20b   :  { %1911 = vmatprep.subr.bf16.mxu1 %v2213_v8  ;;  %v2198_v8 = vcombine.low %v1056_v41, %v1060_v42  ;;  %v2207_v9 = vcombine.high %v1064_v47, %v1068_v48  ;;  %v1176_v42 = vld [vmem:[#allocation4 + $0x3d0] sm:$0xff] }
 0x20e   :  { %1912 = vmatpush1.bf16.msra.mxu1 %v2212_v50  ;;  %v1076_v50 = vld [vmem:[#allocation4 + $0xb0] sm:$0xff] }
 0x20f   :  { %1913 = vmatprep.subr.bf16.mxu1 %v2221_v51  ;;  %v2206_v51 = vcombine.low %v1064_v47, %v1068_v48  ;;  %v2215_v52 = vcombine.high %v1072_v49, %v1076_v50  ;;  %v1057_v48 = vld [vmem:[#allocation4 + $0x18] sm:$0xff] }
 0x212   :  { %1914 = vmatpush1.bf16.msra.mxu1 %v2220_v54  ;;  %v1084_v54 = vld [vmem:[#allocation4 + $0xf0] sm:$0xff] }
 0x213   :  { %1915 = vmatprep.subr.bf16.mxu1 %v2229_v55  ;;  %v2214_v55 = vcombine.low %v1072_v49, %v1076_v50  ;;  %v2223_v56 = vcombine.high %v1080_v53, %v1084_v54  ;;  %v1065_v50 = vld [vmem:[#allocation4 + $0x58] sm:$0xff] }
 0x216   :  { %1916 = vmatpush1.bf16.msra.mxu1 %v2228_v58  ;;  %v1092_v58 = vld [vmem:[#allocation4 + $0x130] sm:$0xff] }
 0x217   :  { %1917 = vmatprep.subr.bf16.mxu1 %v2237_v59  ;;  %v2222_v59 = vcombine.low %v1080_v53, %v1084_v54  ;;  %v2231_v60 = vcombine.high %v1088_v57, %v1092_v58  ;;  %v1073_v54 = vld [vmem:[#allocation4 + $0x98] sm:$0xff] }
 0x21a   :  { %1918 = vmatpush1.bf16.msra.mxu1 %v2236_v62  ;;  %v1100_v62 = vld [vmem:[#allocation4 + $0x170] sm:$0xff] }
 0x21b   :  { %1919 = vmatprep.subr.bf16.mxu1 %v2245_v63  ;;  %v2230_v63 = vcombine.low %v1088_v57, %v1092_v58  ;;  %v2239_v0 = vcombine.high %v1096_v61, %v1100_v62  ;;  %v1081_v58 = vld [vmem:[#allocation4 + $0xd8] sm:$0xff] }
 0x21e   :  { %1920 = vmatpush1.bf16.msra.mxu1 %v2244_v2  ;;  %v1108_v2 = vld [vmem:[#allocation4 + $0x1b0] sm:$0xff] }
 0x21f   :  { %1921 = vmatprep.subr.bf16.mxu1 %v2253_v3  ;;  %v2238_v3 = vcombine.low %v1096_v61, %v1100_v62  ;;  %v2247_v4 = vcombine.high %v1104_v1, %v1108_v2  ;;  %v1089_v62 = vld [vmem:[#allocation4 + $0x118] sm:$0xff] }
 0x222   :  { %1922 = vmatpush1.bf16.msra.mxu1 %v2252_v6  ;;  %v1116_v6 = vld [vmem:[#allocation4 + $0x1f0] sm:$0xff] }
 0x223   :  { %1923 = vmatprep.subr.bf16.mxu1 %v2261_v7  ;;  %v2246_v7 = vcombine.low %v1104_v1, %v1108_v2  ;;  %v2255_v10 = vcombine.high %v1112_v5, %v1116_v6  ;;  %v1097_v2 = vld [vmem:[#allocation4 + $0x158] sm:$0xff] }
 0x226   :  { %1924 = vmatpush1.bf16.msra.mxu1 %v2260_v12  ;;  %v1124_v12 = vld [vmem:[#allocation4 + $0x230] sm:$0xff] }
 0x227   :  { %1925 = vmatprep.subr.bf16.mxu1 %v2269_v13  ;;  %v2254_v13 = vcombine.low %v1112_v5, %v1116_v6  ;;  %v2263_v14 = vcombine.high %v1120_v11, %v1124_v12  ;;  %v1105_v5 = vld [vmem:[#allocation4 + $0x198] sm:$0xff] }
 0x228   :  { %v1109_v6 = vld [vmem:[#allocation4 + $0x1b8] sm:$0xff] }
 0x22a   :  { %1926 = vmatpush1.bf16.msra.mxu1 %v2268_v16  ;;  %v1132_v16 = vld [vmem:[#allocation4 + $0x270] sm:$0xff] }
 0x22b   :  { %1927 = vmatprep.subr.bf16.mxu1 %v2277_v17  ;;  %v2262_v17 = vcombine.low %v1120_v11, %v1124_v12  ;;  %v2271_v18 = vcombine.high %v1128_v15, %v1132_v16  ;;  %v1113_v11 = vld [vmem:[#allocation4 + $0x1d8] sm:$0xff] }
 0x22c   :  { %v1117_v12 = vld [vmem:[#allocation4 + $0x1f8] sm:$0xff] }
 0x22e   :  { %1928 = vmatpush1.bf16.msra.mxu1 %v2276_v20  ;;  %v1140_v20 = vld [vmem:[#allocation4 + $0x2b0] sm:$0xff] }
 0x22f   :  { %1929 = vmatprep.subr.bf16.mxu1 %v2285_v21  ;;  %v2270_v21 = vcombine.low %v1128_v15, %v1132_v16  ;;  %v2279_v22 = vcombine.high %v1136_v19, %v1140_v20  ;;  %v1121_v15 = vld [vmem:[#allocation4 + $0x218] sm:$0xff] }
 0x230   :  { %v1125_v16 = vld [vmem:[#allocation4 + $0x238] sm:$0xff] }
 0x232   :  { %1930 = vmatpush1.bf16.msra.mxu1 %v2284_v27  ;;  %v1148_v27 = vld [vmem:[#allocation4 + $0x2f0] sm:$0xff] }
 0x233   :  { %1931 = vmatprep.subr.bf16.mxu1 %v2293_v28  ;;  %v2278_v28 = vcombine.low %v1136_v19, %v1140_v20  ;;  %v2287_v29 = vcombine.high %v1144_v25, %v1148_v27  ;;  %v1129_v19 = vld [vmem:[#allocation4 + $0x258] sm:$0xff] }
 0x234   :  { %v1133_v20 = vld [vmem:[#allocation4 + $0x278] sm:$0xff] }
 0x236   :  { %1932 = vmatpush1.bf16.msra.mxu1 %v2292_v31  ;;  %v1156_v31 = vld [vmem:[#allocation4 + $0x330] sm:$0xff] }
 0x237   :  { %1933 = vmatprep.subr.bf16.mxu1 %v2301_v32  ;;  %v2286_v32 = vcombine.low %v1144_v25, %v1148_v27  ;;  %v2295_v33 = vcombine.high %v1152_v30, %v1156_v31  ;;  %v1137_v25 = vld [vmem:[#allocation4 + $0x298] sm:$0xff] }
 0x238   :  { %v1141_v27 = vld [vmem:[#allocation4 + $0x2b8] sm:$0xff] }
 0x23a   :  { %1934 = vmatpush1.bf16.msra.mxu1 %v2300_v35  ;;  %v1164_v35 = vld [vmem:[#allocation4 + $0x370] sm:$0xff] }
 0x23b   :  { %1935 = vmatprep.subr.bf16.mxu1 %v2309_v36  ;;  %v2294_v36 = vcombine.low %v1152_v30, %v1156_v31  ;;  %v2303_v37 = vcombine.high %v1160_v34, %v1164_v35  ;;  %v1145_v30 = vld [vmem:[#allocation4 + $0x2d8] sm:$0xff] }
 0x23c   :  { %v1149_v31 = vld [vmem:[#allocation4 + $0x2f8] sm:$0xff] }
 0x23e   :  { %1936 = vmatpush1.bf16.msra.mxu1 %v2308_v39  ;;  %v1172_v39 = vld [vmem:[#allocation4 + $0x3b0] sm:$0xff] }
 0x23f   :  { %1937 = vmatprep.subr.bf16.mxu1 %v2317_v40  ;;  %v2302_v40 = vcombine.low %v1160_v34, %v1164_v35  ;;  %v2311_v41 = vcombine.high %v1168_v38, %v1172_v39  ;;  %v1153_v34 = vld [vmem:[#allocation4 + $0x318] sm:$0xff] }
 0x240   :  { %v1157_v35 = vld [vmem:[#allocation4 + $0x338] sm:$0xff] }
 0x242   :  { %1938 = vmatpush1.bf16.msra.mxu1 %v2316_v45  ;;  %v1180_v45 = vld [vmem:[#allocation4 + $0x3f0] sm:$0xff] }
 0x243   :  { %1950 = vmatprep.subr.bf16.mxu1 %v2199_v46  ;;  %v2310_v46 = vcombine.low %v1168_v38, %v1172_v39  ;;  %v2319_v47 = vcombine.high %v1176_v42, %v1180_v45  ;;  %v1161_v38 = vld [vmem:[#allocation4 + $0x358] sm:$0xff] }
 0x244   :  { %v1165_v39 = vld [vmem:[#allocation4 + $0x378] sm:$0xff] }
 0x245   :  { %1940 = vmatmul.mubr.bf16.vlgmr.msra.gmra.mrb[4].mxu1 %v2703_v43 }
 0x246   :  { %1951 = vmatpush1.bf16.msra.mxu1 %v2198_v8  ;;  %1982 = vmatprep.mubr.bf16.mxu1 %v2705_v44  ;;  %v1061_v8 = vld [vmem:[#allocation4 + $0x38] sm:$0xff] }
 0x247   :  { %1952 = vmatprep.subr.bf16.mxu1 %v2207_v9  ;;  %v2318_v9 = vcombine.low %v1176_v42, %v1180_v45  ;;  %v2201_v49 = vcombine.high %v1057_v48, %v1061_v8  ;;  %v1169_v42 = vld [vmem:[#allocation4 + $0x398] sm:$0xff] }
 0x248   :  { %v1173_v45 = vld [vmem:[#allocation4 + $0x3b8] sm:$0xff] }
 0x24a   :  { %1953 = vmatpush1.bf16.msra.mxu1 %v2206_v51  ;;  %v1069_v51 = vld [vmem:[#allocation4 + $0x78] sm:$0xff] }
 0x24b   :  { %1954 = vmatprep.subr.bf16.mxu1 %v2215_v52  ;;  %v2200_v52 = vcombine.low %v1057_v48, %v1061_v8  ;;  %v2209_v53 = vcombine.high %v1065_v50, %v1069_v51  ;;  %v1177_v48 = vld [vmem:[#allocation4 + $0x3d8] sm:$0xff] }
 0x24c   :  { %v1181_v8 = vld [vmem:[#allocation4 + $0x3f8] sm:$0xff] }
 0x24e   :  { %1955 = vmatpush1.bf16.msra.mxu1 %v2214_v55  ;;  %v1077_v55 = vld [vmem:[#allocation4 + $0xb8] sm:$0xff] }
 0x24f   :  { %1956 = vmatprep.subr.bf16.mxu1 %v2223_v56  ;;  %v2208_v56 = vcombine.low %v1065_v50, %v1069_v51  ;;  %v2217_v57 = vcombine.high %v1073_v54, %v1077_v55  ;;  %v2320_v50 = vcombine.low %v1177_v48, %v1181_v8  ;;  %v1182_v51 = vld [vmem:[%s2780_s4] sm:$0xff] }
 0x252   :  { %1957 = vmatpush1.bf16.msra.mxu1 %v2222_v59  ;;  %v1085_v59 = vld [vmem:[#allocation4 + $0xf8] sm:$0xff] }
 0x253   :  { %1958 = vmatprep.subr.bf16.mxu1 %v2231_v60  ;;  %v2216_v60 = vcombine.low %v1073_v54, %v1077_v55  ;;  %v2225_v61 = vcombine.high %v1081_v58, %v1085_v59 }
 0x256   :  { %1959 = vmatpush1.bf16.msra.mxu1 %v2230_v63  ;;  %v1093_v63 = vld [vmem:[#allocation4 + $0x138] sm:$0xff] }
 0x257   :  { %1960 = vmatprep.subr.bf16.mxu1 %v2239_v0  ;;  %v2224_v0 = vcombine.low %v1081_v58, %v1085_v59  ;;  %v2233_v1 = vcombine.high %v1089_v62, %v1093_v63 }
 0x25a   :  { %1961 = vmatpush1.bf16.msra.mxu1 %v2238_v3  ;;  %v1101_v3 = vld [vmem:[#allocation4 + $0x178] sm:$0xff] }
 0x25b   :  { %1962 = vmatprep.subr.bf16.mxu1 %v2247_v4  ;;  %v2232_v4 = vcombine.low %v1089_v62, %v1093_v63 }
 0x25e   :  { %1963 = vmatpush1.bf16.msra.mxu1 %v2246_v7  ;;  %v2240_v7 = vcombine.low %v1097_v2, %v1101_v3 }
 0x25f   :  { %1964 = vmatprep.subr.bf16.mxu1 %v2255_v10  ;;  %v2249_v10 = vcombine.high %v1105_v5, %v1109_v6 }
 0x262   :  { %1965 = vmatpush1.bf16.msra.mxu1 %v2254_v13  ;;  %v2248_v13 = vcombine.low %v1105_v5, %v1109_v6  ;;  %v1202_v6 = vsub.s32 4, %v2692_v23 }
 0x263   :  { %1966 = vmatprep.subr.bf16.mxu1 %v2263_v14  ;;  %v2257_v14 = vcombine.high %v1113_v11, %v1117_v12 }
 0x266   :  { %1967 = vmatpush1.bf16.msra.mxu1 %v2262_v17  ;;  %v2256_v17 = vcombine.low %v1113_v11, %v1117_v12 }
 0x267   :  { %1968 = vmatprep.subr.bf16.mxu1 %v2271_v18  ;;  %v2265_v18 = vcombine.high %v1121_v15, %v1125_v16 }
 0x26a   :  { %1969 = vmatpush1.bf16.msra.mxu1 %v2270_v21  ;;  %v2264_v21 = vcombine.low %v1121_v15, %v1125_v16 }
 0x26b   :  { %1970 = vmatprep.subr.bf16.mxu1 %v2279_v22  ;;  %v2273_v22 = vcombine.high %v1129_v19, %v1133_v20 }
 0x26e   :  { %1971 = vmatpush1.bf16.msra.mxu1 %v2278_v28  ;;  %v2272_v28 = vcombine.low %v1129_v19, %v1133_v20  ;;  %v1210_v20 = vsub.s32 6, %v2692_v23 }
 0x26f   :  { %1972 = vmatprep.subr.bf16.mxu1 %v2287_v29  ;;  %v2281_v29 = vcombine.high %v1137_v25, %v1141_v27 }
 0x272   :  { %1973 = vmatpush1.bf16.msra.mxu1 %v2286_v32  ;;  %v2280_v32 = vcombine.low %v1137_v25, %v1141_v27 }
 0x273   :  { %1974 = vmatprep.subr.bf16.mxu1 %v2295_v33  ;;  %v2289_v33 = vcombine.high %v1145_v30, %v1149_v31 }
 0x276   :  { %1975 = vmatpush1.bf16.msra.mxu1 %v2294_v36  ;;  %v2288_v36 = vcombine.low %v1145_v30, %v1149_v31 }
 0x277   :  { %1976 = vmatprep.subr.bf16.mxu1 %v2303_v37  ;;  %v2297_v37 = vcombine.high %v1153_v34, %v1157_v35 }
 0x27a   :  { %1977 = vmatpush1.bf16.msra.mxu1 %v2302_v40  ;;  %v2296_v40 = vcombine.low %v1153_v34, %v1157_v35 }
 0x27b   :  { %1978 = vmatprep.subr.bf16.mxu1 %v2311_v41  ;;  %v2305_v41 = vcombine.high %v1161_v38, %v1165_v39 }
 0x27e   :  { %1979 = vmatpush1.bf16.msra.mxu1 %v2310_v46  ;;  %v2304_v46 = vcombine.low %v1161_v38, %v1165_v39 }
 0x27f   :  { %1980 = vmatprep.subr.bf16.mxu1 %v2319_v47  ;;  %v2313_v47 = vcombine.high %v1169_v42, %v1173_v45 }
 0x282   :  { %1981 = vmatpush1.bf16.msra.mxu1 %v2318_v9  ;;  %v2312_v9 = vcombine.low %v1169_v42, %v1173_v45 }
 0x283   :  { %1993 = vmatprep.subr.bf16.mxu1 %v2201_v49  ;;  %v2321_v49 = vcombine.high %v1177_v48, %v1181_v8 }
 0x285   :  { %1983 = vmatmul.mubr.bf16.vlgmr.msra.gmra.mrb[8].mxu1 %v2703_v43 }
 0x286   :  { %1994 = vmatpush1.bf16.msra.mxu1 %v2200_v52  ;;  %2025 = vmatprep.mubr.bf16.mxu1 %v2705_v44  ;;  %v2241_v44 = vcombine.high %v1097_v2, %v1101_v3  ;;  %v1187_v52 = vrot.slane %v1182_v51, %v188_v24  ;;  %v1194_v24 = vsub.s32 2, %v2692_v23 }
 0x287   :  { %1995 = vmatprep.subr.bf16.mxu1 %v2209_v53  ;;  %v1191_v53 = vrot.slane %v1182_v51, %v192_v26  ;;  %v1198_v26 = vsub.s32 3, %v2692_v23 }
 0x289   :  { %v1199_v62 = vrot.slane %v1182_v51, %v1198_v26 }
 0x28a   :  { %1996 = vmatpush1.bf16.msra.mxu1 %v2208_v56 }
 0x28b   :  { %1997 = vmatprep.subr.bf16.mxu1 %v2217_v57 }
 0x28e   :  { %1998 = vmatpush1.bf16.msra.mxu1 %v2216_v60 }
 0x28f   :  { %1999 = vmatprep.subr.bf16.mxu1 %v2225_v61  ;;  %v1195_v61 = vrot.slane %v1182_v51, %v1194_v24 }
 0x292   :  { %2000 = vmatpush1.bf16.msra.mxu1 %v2224_v0 }
 0x293   :  { %2001 = vmatprep.subr.bf16.mxu1 %v2233_v1 }
 0x296   :  { %2002 = vmatpush1.bf16.msra.mxu1 %v2232_v4 }
 0x297   :  { %2003 = vmatprep.subr.bf16.mxu1 %v2241_v44 }
 0x29a   :  { %2004 = vmatpush1.bf16.msra.mxu1 %v2240_v7  ;;  %v1206_v7 = vsub.s32 5, %v2692_v23 }
 0x29b   :  { %2005 = vmatprep.subr.bf16.mxu1 %v2249_v10  ;;  %v1203_v10 = vrot.slane %v1182_v51, %v1202_v6 }
 0x29c   :  { %v1207_v11 = vrot.slane %v1182_v51, %v1206_v7 }
 0x29e   :  { %2006 = vmatpush1.bf16.msra.mxu1 %v2248_v13 }
 0x29f   :  { %2007 = vmatprep.subr.bf16.mxu1 %v2257_v14 }
 0x2a2   :  { %2008 = vmatpush1.bf16.msra.mxu1 %v2256_v17 }
 0x2a3   :  { %2009 = vmatprep.subr.bf16.mxu1 %v2265_v18 }
 0x2a6   :  { %2010 = vmatpush1.bf16.msra.mxu1 %v2264_v21  ;;  %v1214_v21 = vsub.s32 7, %v2692_v23 }
 0x2a7   :  { %2011 = vmatprep.subr.bf16.mxu1 %v2273_v22  ;;  %v1211_v22 = vrot.slane %v1182_v51, %v1210_v20 }
 0x2a8   :  { %v1215_v25 = vrot.slane %v1182_v51, %v1214_v21 }
 0x2aa   :  { %2012 = vmatpush1.bf16.msra.mxu1 %v2272_v28 }
 0x2ab   :  { %2013 = vmatprep.subr.bf16.mxu1 %v2281_v29 }
 0x2ae   :  { %2014 = vmatpush1.bf16.msra.mxu1 %v2280_v32 }
 0x2af   :  { %2015 = vmatprep.subr.bf16.mxu1 %v2289_v33 }
 0x2b2   :  { %2016 = vmatpush1.bf16.msra.mxu1 %v2288_v36 }
 0x2b3   :  { %2017 = vmatprep.subr.bf16.mxu1 %v2297_v37 }
 0x2b6   :  { %2018 = vmatpush1.bf16.msra.mxu1 %v2296_v40 }
 0x2b7   :  { %2019 = vmatprep.subr.bf16.mxu1 %v2305_v41 }
 0x2ba   :  { %2020 = vmatpush1.bf16.msra.mxu1 %v2304_v46 }
 0x2bb   :  { %2021 = vmatprep.subr.bf16.mxu1 %v2313_v47 }
 0x2be   :  { %2022 = vmatpush1.bf16.msra.mxu1 %v2312_v9 }
 0x2bf   :  { %2023 = vmatprep.subr.bf16.mxu1 %v2321_v49 }
 0x2c2   :  { %2024 = vmatpush1.bf16.msra.mxu1 %v2320_v50 }
 0x2c5   :  { %2026 = vmatmul.mubr.bf16.vlgmr.msra.gmra.mrb[12].mxu1 %v2703_v43 }
 0x2d8   :  { %v1898_v54 = vpop.f32.mrb[0].mxu1 }
 0x2d9   :  { %v1899_v55 = vadd.f32 %v1898_v54, %v1187_v52  ;;  %v1900_v56 = vpop.f32.mrb[1].mxu1 }
 0x2da   :  { %v1901_v57 = vadd.f32 %v1900_v56, %v1191_v53  ;;  %v1902_v58 = vpop.f32.mrb[2].mxu1 }
 0x2db   :  { %2036 = vst [vmem:[%s2781_s5] sm:$0xff] %v1899_v55  ;;  %v1903_v43 = vadd.f32 %v1902_v58, %v1187_v52  ;;  %v1904_v59 = vpop.f32.mrb[3].mxu1 }
 0x2dc   :  { %2037 = vst [vmem:[%s2781_s5 + $0x8] sm:$0xff] %v1901_v57  ;;  %v1905_v60 = vadd.f32 %v1904_v59, %v1191_v53 }
 0x2dd   :  { %2044 = vst [vmem:[%s2781_s5 + $0x40] sm:$0xff] %v1903_v43 }
 0x2de   :  { %2045 = vst [vmem:[%s2781_s5 + $0x48] sm:$0xff] %v1905_v60 }
 0x318   :  { %v1941_v63 = vpop.f32.mrb[4].mxu1 }
 0x319   :  { %v1942_v0 = vadd.f32 %v1941_v63, %v1195_v61  ;;  %v1943_v1 = vpop.f32.mrb[5].mxu1 }
 0x31a   :  { %v1944_v2 = vadd.f32 %v1943_v1, %v1199_v62  ;;  %v1945_v3 = vpop.f32.mrb[6].mxu1 }
 0x31b   :  { %2038 = vst [vmem:[%s2781_s5 + $0x10] sm:$0xff] %v1942_v0  ;;  %v1946_v4 = vadd.f32 %v1945_v3, %v1195_v61  ;;  %v1947_v44 = vpop.f32.mrb[7].mxu1 }
 0x31c   :  { %2039 = vst [vmem:[%s2781_s5 + $0x18] sm:$0xff] %v1944_v2  ;;  %v1948_v5 = vadd.f32 %v1947_v44, %v1199_v62 }
 0x31d   :  { %2046 = vst [vmem:[%s2781_s5 + $0x50] sm:$0xff] %v1946_v4 }
 0x31e   :  { %2047 = vst [vmem:[%s2781_s5 + $0x58] sm:$0xff] %v1948_v5 }
 0x358   :  { %v1984_v12 = vpop.f32.mrb[8].mxu1 }
 0x359   :  { %v1985_v13 = vadd.f32 %v1984_v12, %v1203_v10  ;;  %v1986_v14 = vpop.f32.mrb[9].mxu1 }
 0x35a   :  { %v1987_v15 = vadd.f32 %v1986_v14, %v1207_v11  ;;  %v1988_v16 = vpop.f32.mrb[10].mxu1 }
 0x35b   :  { %2040 = vst [vmem:[%s2781_s5 + $0x20] sm:$0xff] %v1985_v13  ;;  %v1989_v17 = vadd.f32 %v1988_v16, %v1203_v10  ;;  %v1990_v18 = vpop.f32.mrb[11].mxu1 }
 0x35c   :  { %2041 = vst [vmem:[%s2781_s5 + $0x28] sm:$0xff] %v1987_v15  ;;  %v1991_v19 = vadd.f32 %v1990_v18, %v1207_v11 }
 0x35d   :  { %2048 = vst [vmem:[%s2781_s5 + $0x60] sm:$0xff] %v1989_v17 }
 0x35e   :  { %2049 = vst [vmem:[%s2781_s5 + $0x68] sm:$0xff] %v1991_v19 }
 0x398   :  { %v2027_v27 = vpop.f32.mrb[12].mxu1 }
 0x399   :  { %v2028_v28 = vadd.f32 %v2027_v27, %v1211_v22  ;;  %v2029_v29 = vpop.f32.mrb[13].mxu1 }
 0x39a   :  { %v2030_v30 = vadd.f32 %v2029_v29, %v1215_v25  ;;  %v2031_v31 = vpop.f32.mrb[14].mxu1 }
 0x39b   :  { %2042 = vst [vmem:[%s2781_s5 + $0x30] sm:$0xff] %v2028_v28  ;;  %v2032_v32 = vadd.f32 %v2031_v31, %v1211_v22  ;;  %v2033_v33 = vpop.f32.mrb[15].mxu1 }
 0x39c   :  { %2043 = vst [vmem:[%s2781_s5 + $0x38] sm:$0xff] %v2030_v30  ;;  %v2034_v34 = vadd.f32 %v2033_v33, %v1215_v25 }
 0x39d   :  { %2050 = vst [vmem:[%s2781_s5 + $0x70] sm:$0xff] %v2032_v32 }
 0x39e   :  { %2051 = vst [vmem:[%s2781_s5 + $0x78] sm:$0xff] %v2034_v34 }
 0x39f   :  { %2056 = vsyncpa [#allocation3], 1 }
 0x3a0   :  { %2057 = vsyncpa [#allocation5], 1 }

</bundles_post_ra>
